<compile_context>
chip_gen: v7x
topology: tpu7x:2x2x1
jax: 0.10.0
libtpu: 0.0.40
codegen_flags: <defaults>
</compile_context>

<pallas_src>
import math

import jax
import jax.numpy as jnp
from jax.experimental import pallas as pl
from jax.experimental.pallas import tpu as pltpu


STATE_SIZE = 4      # CartPole-v0 observation dim
ACTION_SIZE = 2     # CartPole-v0 action dim
H1 = 128
H2 = 256
OUT_PAD = 128       # lane-dense padded output width (real probs live in cols 0..1)


def actor_kernel(x_ref, w1_ref, b1_ref, w2_ref, b2_ref, w3_ref, b3_ref, o_ref):
    tb = x_ref.shape[0]

    # ---- layer 1 (K = 4): VPU broadcast-MACs, skip the MXU entirely -------------
    x = x_ref[...]                                     # (TB, 4)  f32
    w1 = w1_ref[...]                                   # (4, 128) f32
    acc = b1_ref[...] + x[:, 0:1] * w1[0:1, :]         # (TB, 128)
    for k in range(1, STATE_SIZE):                     # static unroll, k = 1..3
        acc = acc + x[:, k:k + 1] * w1[k:k + 1, :]
    h1 = jnp.maximum(acc, 0.0)                         # relu, f32

    # ---- layer 2: MXU, bf16 operands, f32 accumulation --------------------------
    h2 = jnp.dot(h1.astype(jnp.bfloat16), w2_ref[...],
                 preferred_element_type=jnp.float32) + b2_ref[...]   # (TB, 256)
    h2 = jnp.maximum(h2, 0.0)

    # ---- layer 3: MXU, output padded to a lane-dense 128-wide slab --------------
    logits = jnp.dot(h2.astype(jnp.bfloat16), w3_ref[...],
                     preferred_element_type=jnp.float32) + b3_ref[...]  # (TB, 128)

    # ---- 2-class softmax == sigmoid of the logit difference (no XLU reduce) -----
    d = logits[:, 1:2] - logits[:, 0:1]                # (TB, 1)
    p1 = 1.0 / (1.0 + jnp.exp(-d))                     # stable for any d
    p0 = 1.0 - p1

    lanes = jax.lax.broadcasted_iota(jnp.int32, (tb, OUT_PAD), 1)
    out = jnp.where(lanes == 0, p0, jnp.where(lanes == 1, p1, 0.0))
    o_ref[...] = out.astype(o_ref.dtype)               # unmasked lane-dense store


def actor_forward(x, w1, b1, w2, b2, w3, b3, *, tb=256):
    """x: (B, STATE_SIZE) f32; weights in [in, out] layout; biases (1, out).

    Returns softmax probabilities of shape (B, ACTION_SIZE), f32.
    """
    B = x.shape[0]

    # Batch tile: multiple of 8 sublanes, capped so tiny batches stay one tile.
    tb = min(int(tb), int(pl.cdiv(B, 8)) * 8)
    b_pad = int(pl.cdiv(B, tb)) * tb
    if b_pad != B:
        x = jnp.pad(x, ((0, b_pad - B), (0, 0)))

    # Pad the 2-wide output layer to 128 lanes (zeros elsewhere).
    w3p = jnp.zeros((H2, OUT_PAD), jnp.float32).at[:, :ACTION_SIZE].set(w3)
    b3p = jnp.zeros((1, OUT_PAD), jnp.float32).at[:, :ACTION_SIZE].set(b3)

    # bf16 weights for the MXU layers (halves weight DMA); biases stay f32.
    w2b = w2.astype(jnp.bfloat16)
    w3pb = w3p.astype(jnp.bfloat16)

    n_tiles = b_pad // tb
    out = pl.pallas_call(
        actor_kernel,
        out_shape=jax.ShapeDtypeStruct((b_pad, OUT_PAD), jnp.float32),
        grid=(n_tiles,),
        in_specs=[
            pl.BlockSpec((tb, STATE_SIZE), lambda i: (i, 0)),   # x: tiled on batch
            pl.BlockSpec((STATE_SIZE, H1), lambda i: (0, 0)),   # weights/biases:
            pl.BlockSpec((1, H1),          lambda i: (0, 0)),   # VMEM-resident
            pl.BlockSpec((H1, H2),         lambda i: (0, 0)),
            pl.BlockSpec((1, H2),          lambda i: (0, 0)),
            pl.BlockSpec((H2, OUT_PAD),    lambda i: (0, 0)),
            pl.BlockSpec((1, OUT_PAD),     lambda i: (0, 0)),
        ],
        out_specs=pl.BlockSpec((tb, OUT_PAD), lambda i: (i, 0)),
        compiler_params=pltpu.CompilerParams(
            dimension_semantics=("parallel",)),                 # both v7x TCs
    )(x, w1, b1, w2b, b2, w3pb, b3p)

    return out[:B, :ACTION_SIZE]


def init_linear(key, fan_in, fan_out):
    """Deterministic init mimicking PyTorch nn.Linear default (U[-1/sqrt(fan_in), +])."""
    kw, kb = jax.random.split(key)
    bound = 1.0 / math.sqrt(fan_in)
    w = jax.random.uniform(kw, (fan_in, fan_out), jnp.float32, -bound, bound)
    b = jax.random.uniform(kb, (1, fan_out), jnp.float32, -bound, bound)
    return w, b


def reference(x, w1, b1, w2, b2, w3, b3):
    """Pure-JAX reference mirroring the kernel's numerics (bf16 MXU operands)."""
    h1 = jnp.maximum(x @ w1 + b1, 0.0)
    h2 = jnp.maximum(
        jnp.dot(h1.astype(jnp.bfloat16), w2.astype(jnp.bfloat16),
                preferred_element_type=jnp.float32) + b2, 0.0)
    logits = jnp.dot(h2.astype(jnp.bfloat16), w3.astype(jnp.bfloat16),
                     preferred_element_type=jnp.float32) + b3
    return jax.nn.softmax(logits, axis=-1)


if __name__ == "__main__":
    key = jax.random.PRNGKey(0)
    k_x, k1, k2, k3 = jax.random.split(key, 4)

    w1, b1 = init_linear(k1, STATE_SIZE, H1)
    w2, b2 = init_linear(k2, H1, H2)
    w3, b3 = init_linear(k3, H2, ACTION_SIZE)

    # Case 1: small batch (exercises sublane padding; single grid tile).
    batch = 6
    x = jax.random.normal(k_x, (batch, STATE_SIZE), jnp.float32)
    probs = jax.block_until_ready(actor_forward(x, w1, b1, w2, b2, w3, b3))
    ref = reference(x, w1, b1, w2, b2, w3, b3)
    assert probs.shape == (batch, ACTION_SIZE)
    assert jnp.allclose(probs, ref, atol=1e-3), "mismatch vs reference (small batch)"
    assert jnp.allclose(jnp.sum(probs, axis=-1), 1.0, atol=1e-5)

    # Case 2: multi-tile batch grid (pipelined, parallel over batch tiles).
    batch2 = 37
    x2 = jax.random.normal(k_x, (batch2, STATE_SIZE), jnp.float32)
    probs2 = jax.block_until_ready(
        actor_forward(x2, w1, b1, w2, b2, w3, b3, tb=16))
    ref2 = reference(x2, w1, b1, w2, b2, w3, b3)
    assert probs2.shape == (batch2, ACTION_SIZE)
    assert jnp.allclose(probs2, ref2, atol=1e-3), "mismatch vs reference (multi-tile)"
    assert jnp.allclose(jnp.sum(probs2, axis=-1), 1.0, atol=1e-5)

    # TODO(synk): torch.distributions.Categorical has no Pallas equivalent; the
    # kernel returns the probability tensor that fully defines it.
    print("KERNEL_OK")
</pallas_src>

<mosaic_0001>
module attributes {stable_mosaic.version = 11 : i64} {
  func.func @actor_kernel(%arg0: i32, %arg1: memref<8x4xf32, #tpu.memory_space<vmem>>, %arg2: memref<4x128xf32, #tpu.memory_space<vmem>>, %arg3: memref<1x128xf32, #tpu.memory_space<vmem>>, %arg4: memref<128x256xbf16, #tpu.memory_space<vmem>>, %arg5: memref<1x256xf32, #tpu.memory_space<vmem>>, %arg6: memref<256x128xbf16, #tpu.memory_space<vmem>>, %arg7: memref<1x128xf32, #tpu.memory_space<vmem>>, %arg8: memref<8x128xf32, #tpu.memory_space<vmem>>) attributes {dimension_semantics = [#tpu.dimension_semantics<parallel>], iteration_bounds = array<i64: 1>, scalar_prefetch = 0 : i64, scratch_operands = 0 : i64, tpu.core_type = #tpu.core_type<tc>, window_params = [{transform_indices = @transform_0, window_bounds = array<i64: 8, 4>}, {pipeline_mode = #tpu.pipeline_mode<synchronous>, transform_indices = @transform_1, window_bounds = array<i64: 4, 128>}, {pipeline_mode = #tpu.pipeline_mode<synchronous>, transform_indices = @transform_2, window_bounds = array<i64: 1, 128>}, {pipeline_mode = #tpu.pipeline_mode<synchronous>, transform_indices = @transform_3, window_bounds = array<i64: 128, 256>}, {pipeline_mode = #tpu.pipeline_mode<synchronous>, transform_indices = @transform_4, window_bounds = array<i64: 1, 256>}, {pipeline_mode = #tpu.pipeline_mode<synchronous>, transform_indices = @transform_5, window_bounds = array<i64: 256, 128>}, {pipeline_mode = #tpu.pipeline_mode<synchronous>, transform_indices = @transform_6, window_bounds = array<i64: 1, 128>}, {transform_indices = @transform_7, window_bounds = array<i64: 8, 128>}]} {
    %c0 = arith.constant 0 : index
    %c0_0 = arith.constant 0 : index
    %0 = vector.load %arg1[%c0, %c0_0] : memref<8x4xf32, #tpu.memory_space<vmem>>, vector<8x4xf32>
    %c0_1 = arith.constant 0 : index
    %c0_2 = arith.constant 0 : index
    %1 = vector.load %arg2[%c0_1, %c0_2] : memref<4x128xf32, #tpu.memory_space<vmem>>, vector<4x128xf32>
    %c0_3 = arith.constant 0 : index
    %c0_4 = arith.constant 0 : index
    %2 = vector.load %arg3[%c0_3, %c0_4] : memref<1x128xf32, #tpu.memory_space<vmem>>, vector<1x128xf32>
    %3 = vector.extract_strided_slice %0 {offsets = [0, 0], sizes = [8, 1], strides = [1, 1]} : vector<8x4xf32> to vector<8x1xf32>
    %4 = vector.extract_strided_slice %1 {offsets = [0, 0], sizes = [1, 128], strides = [1, 1]} : vector<4x128xf32> to vector<1x128xf32>
    %5 = vector.broadcast %3 : vector<8x1xf32> to vector<8x128xf32>
    %6 = vector.broadcast %4 : vector<1x128xf32> to vector<8x128xf32>
    %7 = arith.mulf %5, %6 : vector<8x128xf32>
    %8 = vector.broadcast %2 : vector<1x128xf32> to vector<8x128xf32>
    %9 = arith.addf %8, %7 : vector<8x128xf32>
    %10 = vector.extract_strided_slice %0 {offsets = [0, 1], sizes = [8, 1], strides = [1, 1]} : vector<8x4xf32> to vector<8x1xf32>
    %11 = vector.extract_strided_slice %1 {offsets = [1, 0], sizes = [1, 128], strides = [1, 1]} : vector<4x128xf32> to vector<1x128xf32>
    %12 = vector.broadcast %10 : vector<8x1xf32> to vector<8x128xf32>
    %13 = vector.broadcast %11 : vector<1x128xf32> to vector<8x128xf32>
    %14 = arith.mulf %12, %13 : vector<8x128xf32>
    %15 = arith.addf %9, %14 : vector<8x128xf32>
    %16 = vector.extract_strided_slice %0 {offsets = [0, 2], sizes = [8, 1], strides = [1, 1]} : vector<8x4xf32> to vector<8x1xf32>
    %17 = vector.extract_strided_slice %1 {offsets = [2, 0], sizes = [1, 128], strides = [1, 1]} : vector<4x128xf32> to vector<1x128xf32>
    %18 = vector.broadcast %16 : vector<8x1xf32> to vector<8x128xf32>
    %19 = vector.broadcast %17 : vector<1x128xf32> to vector<8x128xf32>
    %20 = arith.mulf %18, %19 : vector<8x128xf32>
    %21 = arith.addf %15, %20 : vector<8x128xf32>
    %22 = vector.extract_strided_slice %0 {offsets = [0, 3], sizes = [8, 1], strides = [1, 1]} : vector<8x4xf32> to vector<8x1xf32>
    %23 = vector.extract_strided_slice %1 {offsets = [3, 0], sizes = [1, 128], strides = [1, 1]} : vector<4x128xf32> to vector<1x128xf32>
    %24 = vector.broadcast %22 : vector<8x1xf32> to vector<8x128xf32>
    %25 = vector.broadcast %23 : vector<1x128xf32> to vector<8x128xf32>
    %26 = arith.mulf %24, %25 : vector<8x128xf32>
    %27 = arith.addf %21, %26 : vector<8x128xf32>
    %cst = arith.constant 0.000000e+00 : f32
    %28 = vector.broadcast %cst : f32 to vector<8x128xf32>
    %29 = arith.maximumf %27, %28 : vector<8x128xf32>
    %30 = arith.truncf %29 : vector<8x128xf32> to vector<8x128xbf16>
    %c0_5 = arith.constant 0 : index
    %c0_6 = arith.constant 0 : index
    %31 = vector.load %arg4[%c0_5, %c0_6] : memref<128x256xbf16, #tpu.memory_space<vmem>>, vector<128x256xbf16>
    %cst_7 = arith.constant dense<0.000000e+00> : vector<8x256xf32>
    %32 = tpu.matmul %30, %31, %cst_7 {dimension_numbers = #tpu.dot_dimension_numbers<[1], [0], [0], [1], [0, 0, 1, 1], [], []>} : vector<8x128xbf16>, vector<128x256xbf16>, vector<8x256xf32> -> vector<8x256xf32>
    %c0_8 = arith.constant 0 : index
    %c0_9 = arith.constant 0 : index
    %33 = vector.load %arg5[%c0_8, %c0_9] : memref<1x256xf32, #tpu.memory_space<vmem>>, vector<1x256xf32>
    %34 = vector.broadcast %33 : vector<1x256xf32> to vector<8x256xf32>
    %35 = arith.addf %32, %34 : vector<8x256xf32>
    %cst_10 = arith.constant 0.000000e+00 : f32
    %36 = vector.broadcast %cst_10 : f32 to vector<8x256xf32>
    %37 = arith.maximumf %35, %36 : vector<8x256xf32>
    %38 = arith.truncf %37 : vector<8x256xf32> to vector<8x256xbf16>
    %c0_11 = arith.constant 0 : index
    %c0_12 = arith.constant 0 : index
    %39 = vector.load %arg6[%c0_11, %c0_12] : memref<256x128xbf16, #tpu.memory_space<vmem>>, vector<256x128xbf16>
    %cst_13 = arith.constant dense<0.000000e+00> : vector<8x128xf32>
    %40 = tpu.matmul %38, %39, %cst_13 {dimension_numbers = #tpu.dot_dimension_numbers<[1], [0], [0], [1], [0, 0, 1, 1], [], []>} : vector<8x256xbf16>, vector<256x128xbf16>, vector<8x128xf32> -> vector<8x128xf32>
    %c0_14 = arith.constant 0 : index
    %c0_15 = arith.constant 0 : index
    %41 = vector.load %arg7[%c0_14, %c0_15] : memref<1x128xf32, #tpu.memory_space<vmem>>, vector<1x128xf32>
    %42 = vector.broadcast %41 : vector<1x128xf32> to vector<8x128xf32>
    %43 = arith.addf %40, %42 : vector<8x128xf32>
    %44 = vector.extract_strided_slice %43 {offsets = [0, 1], sizes = [8, 1], strides = [1, 1]} : vector<8x128xf32> to vector<8x1xf32>
    %45 = vector.extract_strided_slice %43 {offsets = [0, 0], sizes = [8, 1], strides = [1, 1]} : vector<8x128xf32> to vector<8x1xf32>
    %46 = arith.subf %44, %45 : vector<8x1xf32>
    %cst_16 = arith.constant 0.000000e+00 : f32
    %47 = vector.broadcast %cst_16 : f32 to vector<8x1xf32>
    %48 = arith.subf %47, %46 : vector<8x1xf32>
    %49 = math.exp %48 : vector<8x1xf32>
    %cst_17 = arith.constant 1.000000e+00 : f32
    %50 = vector.broadcast %cst_17 : f32 to vector<8x1xf32>
    %51 = arith.addf %50, %49 : vector<8x1xf32>
    %cst_18 = arith.constant 1.000000e+00 : f32
    %52 = vector.broadcast %cst_18 : f32 to vector<8x1xf32>
    %53 = arith.divf %52, %51 : vector<8x1xf32>
    %cst_19 = arith.constant 1.000000e+00 : f32
    %54 = vector.broadcast %cst_19 : f32 to vector<8x1xf32>
    %55 = arith.subf %54, %53 : vector<8x1xf32>
    %56 = tpu.iota {dimensions = array<i32: 1>} : vector<8x128xi32>
    %c0_i32 = arith.constant 0 : i32
    %57 = vector.broadcast %c0_i32 : i32 to vector<8x128xi32>
    %58 = arith.cmpi eq, %56, %57 : vector<8x128xi32>
    %c1_i32 = arith.constant 1 : i32
    %59 = vector.broadcast %c1_i32 : i32 to vector<8x128xi32>
    %60 = arith.cmpi eq, %56, %59 : vector<8x128xi32>
    %cst_20 = arith.constant 0.000000e+00 : f32
    %61 = vector.shape_cast %53 : vector<8x1xf32> to vector<8x1xf32>
    %62 = vector.broadcast %61 : vector<8x1xf32> to vector<8x128xf32>
    %63 = vector.broadcast %cst_20 : f32 to vector<8x128xf32>
    %64 = arith.select %60, %62, %63 : vector<8x128xi1>, vector<8x128xf32>
    %65 = vector.shape_cast %55 : vector<8x1xf32> to vector<8x1xf32>
    %66 = vector.broadcast %65 : vector<8x1xf32> to vector<8x128xf32>
    %67 = arith.select %58, %66, %64 : vector<8x128xi1>, vector<8x128xf32>
    %c0_21 = arith.constant 0 : index
    %c0_22 = arith.constant 0 : index
    %68 = vector.load %arg8[%c0_21, %c0_22] : memref<8x128xf32, #tpu.memory_space<vmem>>, vector<8x128xf32>
    tpu.vector_store %arg8[%c0_21, %c0_22], %67 {strides = array<i32>} : memref<8x128xf32, #tpu.memory_space<vmem>>, vector<8x128xf32>,
    return
  }
  func.func @transform_0(%arg0: i32) -> (i32, i32) {
    %c0_i32 = arith.constant 0 : i32
    %c0_i32_0 = arith.constant 0 : i32
    return %arg0, %c0_i32 : i32, i32
  }
  func.func @transform_1(%arg0: i32) -> (i32, i32) {
    %c0_i32 = arith.constant 0 : i32
    %c0_i32_0 = arith.constant 0 : i32
    %c0_i32_1 = arith.constant 0 : i32
    return %c0_i32, %c0_i32_0 : i32, i32
  }
  func.func @transform_2(%arg0: i32) -> (i32, i32) {
    %c0_i32 = arith.constant 0 : i32
    %c0_i32_0 = arith.constant 0 : i32
    %c0_i32_1 = arith.constant 0 : i32
    return %c0_i32, %c0_i32_0 : i32, i32
  }
  func.func @transform_3(%arg0: i32) -> (i32, i32) {
    %c0_i32 = arith.constant 0 : i32
    %c0_i32_0 = arith.constant 0 : i32
    %c0_i32_1 = arith.constant 0 : i32
    return %c0_i32, %c0_i32_0 : i32, i32
  }
  func.func @transform_4(%arg0: i32) -> (i32, i32) {
    %c0_i32 = arith.constant 0 : i32
    %c0_i32_0 = arith.constant 0 : i32
    %c0_i32_1 = arith.constant 0 : i32
    return %c0_i32, %c0_i32_0 : i32, i32
  }
  func.func @transform_5(%arg0: i32) -> (i32, i32) {
    %c0_i32 = arith.constant 0 : i32
    %c0_i32_0 = arith.constant 0 : i32
    %c0_i32_1 = arith.constant 0 : i32
    return %c0_i32, %c0_i32_0 : i32, i32
  }
  func.func @transform_6(%arg0: i32) -> (i32, i32) {
    %c0_i32 = arith.constant 0 : i32
    %c0_i32_0 = arith.constant 0 : i32
    %c0_i32_1 = arith.constant 0 : i32
    return %c0_i32, %c0_i32_0 : i32, i32
  }
  func.func @transform_7(%arg0: i32) -> (i32, i32) {
    %c0_i32 = arith.constant 0 : i32
    %c0_i32_0 = arith.constant 0 : i32
    return %arg0, %c0_i32 : i32, i32
  }
}

</mosaic_0001>

<bundles_post_ra>
// kernel: tpu_custom_call.1
= control target key start
LH: loop header
LB: loop body
LE: loop exit
PB: predicated region body
PF: predicated region fallthrough
CT: control target
= control target key end

     0   :  { %12 = vsyncpa [#allocation3], 0  ;;  %s775_s0 = inlined_call_operand.vmem [shape: f32[8,4], index: 0, kind: input, shape index: {}]   ;;  %s776_s1 = inlined_call_operand.vmem [shape: f32[4,128], index: 1, kind: input, shape index: {}]   ;;  %s777_s2 = inlined_call_operand.vmem [shape: f32[1,128], index: 2, kind: input, shape index: {}]   ;;  %s778_s3 = inlined_call_operand.hbm [shape: bf16[128,256], index: 3, kind: input, shape index: {}]   ;;  %s779_s4 = inlined_call_operand.vmem [shape: f32[1,256], index: 4, kind: input, shape index: {}]   ;;  %s780_s5 = inlined_call_operand.hbm [shape: bf16[256,128], index: 5, kind: input, shape index: {}]   ;;  %s781_s6 = inlined_call_operand.vmem [shape: f32[1,128], index: 6, kind: input, shape index: {}]   ;;  %s782_s7 = inlined_call_operand.hbm [shape: f32[8,128], index: 7, kind: output, shape index: {}]  }
   0x1   :  { %13 = vsyncpa [#allocation6], 0 }
   0x2   :  { %14 = vsyncpa [#allocation4], 0  ;;  %s670_s24 = smov [#allocation2]   ;;  %s598_s28 = scalar_lea.hbm %s778_s3, 2048 }
   0x3   :  { %s26_s25 = sshll.u32 %s670_s24, 4  ;;  %p599_p0 = scmp.ne.s32.totalorder %s778_s3, %s598_s28  ;;  %s27_s25 = int_to_ptr.vmem [resolvable:$true] %s26_s25 }
   0x4   :  { %p602_p1 = scmp.lt.u32.totalorder %s598_s28, %s778_s3 }
   0x6   :  { %p604_p2 = pnand %p602_p1, %p599_p0 }
   0x8   :  { %607 = shalt.err (!%p604_p2)
}
   0x9   :  { %s608_s10 = scalar_lea.vmem %s27_s25, 2048  ;;  %p613_p4 = scmp.lt.s32.totalorder %s27_s25, %s27_s25 }
   0xa   :  { %p609_p3 = scmp.ne.s32.totalorder %s27_s25, %s608_s10  ;;  %p614_p5 = scmp.lt.s32.totalorder %s608_s10, %s608_s10 }
   0xc   :  { %p615_p6 = por %p614_p5, %p613_p4 }
   0xe   :  { %p616_p7 = pnand %p615_p6, %p609_p3 }
  0x10   :  { %619 = shalt.err (!%p616_p7)
}
  0x11   :  { %s671_s11 = smov 128   ;;  %s672_s12 = smov 8  }
  0x12   :  { %32 = dma.hbm_to_vmem [thread:$0]  %s778_s3, 2048, %s27_s25, [#allocation3], %s671_s11, %s671_s11, %s672_s12  }
  0x13   :  { %s673_s15 = smov [#allocation5]   ;;  %s620_s19 = scalar_lea.hbm %s780_s5, 2048 }
  0x14   :  { %s40_s16 = sshll.u32 %s673_s15, 4  ;;  %p621_p8 = scmp.ne.s32.totalorder %s780_s5, %s620_s19  ;;  %s41_s16 = int_to_ptr.vmem [resolvable:$true] %s40_s16 }
  0x15   :  { %p624_p9 = scmp.lt.u32.totalorder %s620_s19, %s780_s5 }
  0x17   :  { %p626_p10 = pnand %p624_p9, %p621_p8 }
  0x19   :  { %629 = shalt.err (!%p626_p10)
}
  0x1a   :  { %s630_s24 = scalar_lea.vmem %s41_s16, 2048  ;;  %p635_p12 = scmp.lt.s32.totalorder %s41_s16, %s41_s16 }
  0x1b   :  { %p631_p11 = scmp.ne.s32.totalorder %s41_s16, %s630_s24  ;;  %p636_p13 = scmp.lt.s32.totalorder %s630_s24, %s630_s24 }
  0x1d   :  { %p637_p0 = por %p636_p13, %p635_p12 }
  0x1f   :  { %p638_p1 = pnand %p637_p0, %p631_p11 }
  0x21   :  { %641 = shalt.err (!%p638_p1)
}
  0x22   :  { %s674_s3 = smov 64   ;;  %s675_s25 = smov 4  }
  0x23   :  { %46 = dma.hbm_to_vmem [thread:$0]  %s780_s5, 2048, %s41_s16, [#allocation6], %s674_s3, %s674_s3, %s675_s25  }
  0x24   :  { %664 = dma.done.wait [#allocation3], 2048  }
  0x25   :  { %665 = vsyncadd [#allocation3], 4294965248 }
  0x26   :  { %666 = dma.done.wait [#allocation6], 2048  }
  0x27   :  { %667 = vsyncadd [#allocation6], 4294965248  ;;  %v676_v0 = vmov 0   ;;  %v677_v1 = vmov 2   ;;  %v56_v2 = vld [vmem:[%s775_s0] sm:$0xff]  ;;  %v678_v7 = vmov 1   ;;  %v64_v33 = vlaneseq }
  0x28   :  { %549 = vset.pattern.permute.xlu0 %v676_v0  ;;  %551 = vset.pattern.permute.xlu1 %v677_v1  ;;  %v554_v3 = vld [vmem:[#allocation2 + $0x4] ss:$8 sps:$4 sm:$0xff]   ;;  %v556_v4 = vld [vmem:[#allocation2] ss:$8 sps:$4 sm:$0xff]   ;;  %v557_v5 = vld [vmem:[#allocation2 + $0x14] ss:$8 sps:$4 sm:$0xff]  }
  0x29   :  { %248 = vmatprep.mubr.bf16.mxu0 %v676_v0  ;;  %61 = vperm.xlu0 %549, %v56_v2   ;;  %v559_v6 = vld [vmem:[#allocation2 + $0x10] ss:$8 sps:$4 sm:$0xff]   ;;  %v679_v8 = vmov 3   ;;  %v560_v9 = vld [vmem:[#allocation2 + $0x24] ss:$8 sps:$4 sm:$0xff]   ;;  %v65_v34 = vshrl.u32 %v64_v33, 7 }
  0x2a   :  { %87 = vperm.xlu1 %551, %v56_v2   ;;  %216 = vmatprep.subr.bf16.mxu0 %v554_v3  ;;  %v562_v10 = vld [vmem:[#allocation2 + $0x20] ss:$8 sps:$4 sm:$0xff]   ;;  %v563_v11 = vld [vmem:[#allocation2 + $0x34] ss:$8 sps:$4 sm:$0xff]   ;;  %v565_v12 = vld [vmem:[#allocation2 + $0x30] ss:$8 sps:$4 sm:$0xff]  }
  0x2b   :  { %217 = vmatpush1.bf16.msra.mxu0 %v556_v4  ;;  %v566_v13 = vld [vmem:[#allocation2 + $0x44] ss:$8 sps:$4 sm:$0xff]   ;;  %v568_v14 = vld [vmem:[#allocation2 + $0x40] ss:$8 sps:$4 sm:$0xff]   ;;  %v569_v15 = vld [vmem:[#allocation2 + $0x54] ss:$8 sps:$4 sm:$0xff]  }
  0x2c   :  { %218 = vmatprep.subr.bf16.mxu0 %v557_v5  ;;  %v578_v16 = vld [vmem:[#allocation5 + $0x40] sm:$0xff]   ;;  %v580_v18 = vld [vmem:[#allocation5 + $0x48] sm:$0xff]   ;;  %v571_v19 = vld [vmem:[#allocation2 + $0x50] ss:$8 sps:$4 sm:$0xff]   ;;  %v66_v35 = vsub.s32 0, %v65_v34  ;;  %v82_v38 = vsub.s32 1, %v65_v34 }
  0x2d   :  { %550 = vset.pattern.permute.xlu0 %v678_v7  ;;  %v579_v17 = vld [vmem:[#allocation5] sm:$0xff]   ;;  %515 = vmatprep.subr.bf16.mxu1 %v578_v16  ;;  %v581_v21 = vld [vmem:[#allocation5 + $0x8] sm:$0xff]   ;;  %v582_v23 = vld [vmem:[#allocation5 + $0x50] sm:$0xff]   ;;  %v92_v40 = vsub.s32 2, %v65_v34  ;;  %v102_v42 = vsub.s32 3, %v65_v34 }
  0x2e   :  { %552 = vset.pattern.permute.xlu1 %v679_v8  ;;  %77 = vperm.xlu0 %550, %v56_v2   ;;  %v572_v20 = vld [vmem:[#allocation2 + $0x64] ss:$8 sps:$4 sm:$0xff]   ;;  %v574_v22 = vld [vmem:[#allocation2 + $0x60] ss:$8 sps:$4 sm:$0xff]   ;;  %v575_v24 = vld [vmem:[#allocation2 + $0x74] ss:$8 sps:$4 sm:$0xff]  }
  0x2f   :  { %97 = vperm.xlu1 %552, %v56_v2   ;;  %219 = vmatpush1.bf16.msra.mxu0 %v559_v6  ;;  %v583_v25 = vld [vmem:[#allocation5 + $0x10] sm:$0xff]   ;;  %v584_v26 = vld [vmem:[#allocation5 + $0x58] sm:$0xff]   ;;  %v586_v29 = vld [vmem:[#allocation5 + $0x60] sm:$0xff]  }
  0x30   :  { %220 = vmatprep.subr.bf16.mxu0 %v560_v9  ;;  %516 = vmatpush3.bf16.msra.mxu1 %v579_v17  ;;  %v577_v27 = vld [vmem:[#allocation2 + $0x70] ss:$8 sps:$4 sm:$0xff]   ;;  %v587_v30 = vld [vmem:[#allocation5 + $0x20] sm:$0xff]   ;;  %v588_v31 = vld [vmem:[#allocation5 + $0x68] sm:$0xff]  }
  0x31   :  { %517 = vmatprep.subr.bf16.mxu1 %v580_v18  ;;  %v585_v28 = vld [vmem:[#allocation5 + $0x18] sm:$0xff]   ;;  %v589_v32 = vld [vmem:[#allocation5 + $0x28] sm:$0xff]   ;;  %v57_v36 = vld [vmem:[%s776_s1] sm:$0xf] }
  0x32   :  { %v67_v37 = vrot.slane %v57_v36, %v66_v35  ;;  %v83_v44 = vrot.slane %v57_v36, %v82_v38  ;;  %v481_v45 = vld [vmem:[%s777_s2] ss:$0 sm:$0xff]  ;;  %v93_v46 = vrot.slane %v57_v36, %v92_v40  ;;  %v103_v47 = vrot.slane %v57_v36, %v102_v42  ;;  %v590_v59 = vld [vmem:[#allocation5 + $0x70] sm:$0xff]   ;;  %v592_v61 = vld [vmem:[#allocation5 + $0x78] sm:$0xff]  }
  0x33   :  { %553 = vset.pattern.permute.xlu1 %v678_v7  ;;  %221 = vmatpush1.bf16.msra.mxu0 %v562_v10  ;;  %v591_v60 = vld [vmem:[#allocation5 + $0x30] sm:$0xff]   ;;  %v593_v62 = vld [vmem:[#allocation5 + $0x38] sm:$0xff]   ;;  %v124_v63 = vld [vmem:[%s779_s4] sm:$0x3]  ;;  %s680_s4 = smov 1  }
  0x34   :  { %222 = vmatprep.subr.bf16.mxu0 %v563_v11  ;;  %518 = vmatpush3.bf16.msra.mxu1 %v581_v21  ;;  %v129_v0 = vrot.slane %v124_v63, %v66_v35  ;;  %v133_v1 = vrot.slane %v124_v63, %v82_v38 }
  0x35   :  { %519 = vmatprep.subr.bf16.mxu1 %v582_v23 }
  0x37   :  { %223 = vmatpush1.bf16.msra.mxu0 %v565_v12 }
  0x38   :  { %224 = vmatprep.subr.bf16.mxu0 %v566_v13  ;;  %520 = vmatpush3.bf16.msra.mxu1 %v583_v25  ;;  %v498_v13 = vld [vmem:[%s781_s6] ss:$0 sm:$0xff]  ;;  %s681_s6 = smov [#allocation7]  }
  0x39   :  { %521 = vmatprep.subr.bf16.mxu1 %v584_v26  ;;  %s471_s11 = sshll.u32 %s681_s6, 4  ;;  %s472_s11 = int_to_ptr.vmem [resolvable:$true] %s471_s11 }
  0x3a   :  { %s642_s12 = scalar_lea.vmem %s472_s11, 128  ;;  %p647_p3 = scmp.lt.s32.totalorder %s472_s11, %s472_s11 }
  0x3b   :  { %225 = vmatpush1.bf16.msra.mxu0 %v568_v14  ;;  %p643_p2 = scmp.ne.s32.totalorder %s472_s11, %s642_s12  ;;  %p648_p4 = scmp.lt.s32.totalorder %s642_s12, %s642_s12 }
  0x3c   :  { %226 = vmatprep.subr.bf16.mxu0 %v569_v15  ;;  %522 = vmatpush3.bf16.msra.mxu1 %v585_v28 }
  0x3d   :  { %523 = vmatprep.subr.bf16.mxu1 %v586_v29  ;;  %p649_p5 = por %p648_p4, %p647_p3 }
  0x3f   :  { %227 = vmatpush1.bf16.msra.mxu0 %v571_v19  ;;  %p650_p6 = pnand %p649_p5, %p643_p2 }
  0x40   :  { %228 = vmatprep.subr.bf16.mxu0 %v572_v20  ;;  %524 = vmatpush3.bf16.msra.mxu1 %v587_v30 }
  0x41   :  { %525 = vmatprep.subr.bf16.mxu1 %v588_v31 }
  0x43   :  { %229 = vmatpush1.bf16.msra.mxu0 %v574_v22 }
  0x44   :  { %230 = vmatprep.subr.bf16.mxu0 %v575_v24  ;;  %526 = vmatpush3.bf16.msra.mxu1 %v589_v32 }
  0x45   :  { %527 = vmatprep.subr.bf16.mxu1 %v590_v59 }
  0x47   :  { %231 = vmatpush1.bf16.msra.mxu0 %v577_v27  ;;  %v449_v27 = vand.u32 127, %v64_v33 }
  0x48   :  { %528 = vmatpush3.bf16.msra.mxu1 %v591_v60 }
  0x49   :  { %529 = vmatprep.subr.bf16.mxu1 %v592_v61  ;;  %vm451_vm0 = vcmp.eq.s32.totalorder %v449_v27, 1  ;;  %vm450_vm1 = vcmp.eq.s32.totalorder %v449_v27, 0 }
  0x4c   :  { %530 = vmatpush3.bf16.msra.mxu1 %v593_v62 }
  0xa8   :  { %v62_v39 = vpop.permute.xlu0 %61 }
  0xa9   :  { %v88_v41 = vpop.permute.xlu1 %87  ;;  %v68_v43 = vmul.f32 %v67_v37, %v62_v39 }
  0xaa   :  { %v94_v52 = vmul.f32 %v93_v46, %v88_v41 }
  0xab   :  { %v75_v50 = vadd.f32 %v481_v45, %v68_v43 }
  0xad   :  { %v78_v48 = vpop.permute.xlu0 %77 }
  0xae   :  { %v98_v49 = vpop.permute.xlu1 %97  ;;  %v84_v51 = vmul.f32 %v83_v44, %v78_v48 }
  0xaf   :  { %v104_v54 = vmul.f32 %v103_v47, %v98_v49 }
  0xb0   :  { %v85_v53 = vadd.f32 %v84_v51, %v75_v50 }
  0xb2   :  { %v95_v55 = vadd.f32 %v94_v52, %v85_v53 }
  0xb4   :  { %v105_v56 = vadd.f32 %v104_v54, %v95_v55 }
  0xb6   :  { %v106_v57 = vmax.f32 %v105_v56, 0.0 }
  0xb8   :  { %v107_v58 = vpack.c.bf16 %v106_v57, %v106_v57 }
  0xba   :  { %249 = vmatmul.mubr.bf16.vlgmr.msra.gmra.mrb[0].mxu0 %v107_v58 }
 0x18d   :  { %v250_v2 = vpop.f32.mrb[0].mxu0 }
 0x18e   :  { %v251_v3 = vadd.f32 %v250_v2, %v129_v0  ;;  %v252_v4 = vpop.f32.mrb[1].mxu0 }
 0x18f   :  { %v253_v5 = vadd.f32 %v252_v4, %v133_v1  ;;  %v254_v6 = vpop.f32.mrb[2].mxu0 }
 0x190   :  { %v257_v7 = vmax.f32 %v251_v3, 0.0  ;;  %v255_v8 = vpop.f32.mrb[3].mxu0 }
 0x191   :  { %v258_v9 = vmax.f32 %v253_v5, 0.0 }
 0x192   :  { %v259_v11 = vpack.c.bf16 %v257_v7, %v257_v7 }
 0x193   :  { %v260_v10 = vpack.c.bf16 %v258_v9, %v258_v9 }
 0x195   :  { %428 = vmatprep.mubr.bf16.mxu1 %v260_v10 }
 0x196   :  { %429 = vmatmul.mubr.bf16.vlgmr.msra.gmra.mrb[0].mxu1 %v259_v11 }
 0x269   :  { %v531_v12 = vpop.f32.mrb[0].mxu1 }
 0x26a   :  { %v532_v14 = vpop.f32.mrb[1].mxu1 }
 0x26b   :  { %v533_v15 = vadd.f32 %v532_v14, %v531_v12  ;;  %v534_v16 = vpop.f32.mrb[2].mxu1 }
 0x26c   :  { %v535_v17 = vpop.f32.mrb[3].mxu1 }
 0x26d   :  { %v431_v18 = vadd.f32 %v533_v15, %v498_v13 }
 0x26f   :  { %437 = vrot.lane.b32.xlu1 %v431_v18, %s680_s4 }
 0x2e1   :  { %v438_v19 = vpop.permute.xlu1 %437 }
 0x2e2   :  { %v440_v20 = vsub.f32 %v431_v18, %v438_v19 }
 0x2e4   :  { %v441_v21 = vsub.f32 0.0, %v440_v20 }
 0x2e6   :  { %v442_v22 = vmul.f32 1.442695, %v441_v21 }
 0x2e8   :  { %594 = vpow2.f32 %v442_v22 }
 0x2f2   :  { %v595_v23 = vpop.eup %594 }
 0x2f3   :  { %v444_v24 = vadd.f32 1.0, %v595_v23 }
 0x2f5   :  { %596 = vrcp.f32 %v444_v24 }
 0x2ff   :  { %v597_v25 = vpop.eup %596 }
 0x300   :  { %454 = vperm.xlu0 %550, %v597_v25   ;;  %v447_v26 = vsub.f32 1.0, %v597_v25 }
 0x302   :  { %460 = vperm.xlu1 %553, %v447_v26  }
 0x37f   :  { %v455_v28 = vpop.permute.xlu0 %454 }
 0x380   :  { %v457_v29 = vsel %vm451_vm0, %v455_v28, 0.0 }
 0x381   :  { %v461_v30 = vpop.permute.xlu1 %460 }
 0x382   :  { %v463_v31 = vsel %vm450_vm1, %v461_v30, %v457_v29 }
 0x383   :  { %464 = vst [vmem:[#allocation7] sm:$0xff] %v463_v31 }
 0x384   :  { %653 = shalt.err (!%p650_p6)
}
 0x385   :  { %s654_s15 = scalar_lea.hbm %s782_s7, 128 }
 0x386   :  { %p655_p7 = scmp.ne.s32.totalorder %s782_s7, %s654_s15  ;;  %p658_p8 = scmp.lt.u32.totalorder %s654_s15, %s782_s7 }
 0x388   :  { %p660_p9 = pnand %p658_p8, %p655_p7 }
 0x38a   :  { %663 = shalt.err (!%p660_p9)
}
 0x38b   :  { %474 = dma.vmem_to_hbm [thread:$0]  %s472_s11, 128, %s782_s7, [#allocation4]  }
 0x38c   :  { %668 = dma.done.wait [#allocation4], 128  }
 0x38d   :  { %669 = vsyncadd [#allocation4], 4294967168 }
 0x38e   :  { %478 = vsyncpa [#allocation3], 1 }
 0x38f   :  { %479 = vsyncpa [#allocation6], 1 }
 0x390   :  { %480 = vsyncpa [#allocation4], 1 }

</bundles_post_ra>
